<compile_context>
chip_gen: v5e
topology: v5e:2x2
jax: 0.10.0
libtpu: 0.0.40
codegen_flags: <defaults>
</compile_context>

<pallas_src>
import functools

import jax
import jax.numpy as jnp
from jax.experimental import pallas as pl
from jax.experimental.pallas import tpu as pltpu


_ACTIVATIONS = {
    "tanh": jnp.tanh,
    "relu": lambda y: jnp.maximum(y, 0.0),
    "sigmoid": jax.nn.sigmoid,
    # PyTorch nn.GELU() default is exact (erf), not the tanh approximation.
    "gelu": lambda y: jax.nn.gelu(y, approximate=False),
    # PyTorch nn.LeakyReLU() default negative slope is 0.01.
    "lrelu": lambda y: jnp.where(y >= 0.0, y, 0.01 * y),
}


def _round_up(x, m):
    return ((x + m - 1) // m) * m


def _fused_mlp_kernel(*refs, num_layers, activation):
    """refs = (x_ref, w0_ref, b0_ref, w1_ref, b1_ref, ..., o_ref).

    x_ref: (TM, Din); wl_ref: (Dl_in, Dl_out); bl_ref: (1, Dl_out);
    o_ref: (TM, Dout_last). Layers are unrolled at trace time; the
    intermediate activation stays on-chip between layers.
    """
    x_ref = refs[0]
    o_ref = refs[-1]
    act = _ACTIVATIONS[activation]

    y = x_ref[...]
    for layer in range(num_layers):
        w_ref = refs[1 + 2 * layer]
        b_ref = refs[2 + 2 * layer]
        y = jnp.dot(y, w_ref[...], preferred_element_type=jnp.float32)
        y = y + b_ref[...]          # (1, Dout) broadcast, once per layer
        y = act(y)
    o_ref[...] = y.astype(o_ref.dtype)


def mlp_forward(x, params, activation="tanh", tile_m=512):
    """Fused multi-layer MLP forward.

    x: (N, Din) float32
    params: list of (W: (Dl_in, Dl_out), b: (Dl_out,))
    """
    if activation not in _ACTIVATIONS:
        raise ValueError(f"unknown activation {activation}")

    n, din = x.shape
    dout = params[-1][0].shape[1]
    num_layers = len(params)

    # Row tile: sublane-aligned (multiple of 8), capped by tile_m; pad N so
    # the grid divides evenly. Padded rows compute garbage and are sliced off.
    tm = min(tile_m, _round_up(n, 8))
    n_pad = _round_up(n, tm)
    if n_pad != n:
        x = jnp.pad(x, ((0, n_pad - n), (0, 0)))
    grid = (n_pad // tm,)

    # Input specs: row-tiled x, plus each (W, b) resident (constant index_map).
    in_specs = [pl.BlockSpec((tm, din), lambda i: (i, 0))]
    flat_params = []
    for w, b in params:
        d_i, d_o = w.shape
        in_specs.append(pl.BlockSpec((d_i, d_o), lambda i: (0, 0)))
        in_specs.append(pl.BlockSpec((1, d_o), lambda i: (0, 0)))
        flat_params.append(w)
        flat_params.append(b.reshape(1, d_o))

    kernel = functools.partial(
        _fused_mlp_kernel, num_layers=num_layers, activation=activation
    )

    # Advisory cost estimate for XLA scheduling around the custom call.
    flops = 2 * n_pad * sum(w.shape[0] * w.shape[1] for w, _ in params)
    transcendentals = (
        n_pad * sum(w.shape[1] for w, _ in params)
        if activation in ("tanh", "sigmoid", "gelu")
        else 0
    )
    bytes_accessed = 4 * (
        n_pad * din
        + n_pad * dout
        + sum(w.size + b.size for w, b in params)
    )

    out = pl.pallas_call(
        kernel,
        out_shape=jax.ShapeDtypeStruct((n_pad, dout), jnp.float32),
        grid=grid,
        in_specs=in_specs,
        out_specs=pl.BlockSpec((tm, dout), lambda i: (i, 0)),
        compiler_params=pltpu.CompilerParams(
            dimension_semantics=("parallel",),
        ),
        cost_estimate=pl.CostEstimate(
            flops=flops,
            transcendentals=transcendentals,
            bytes_accessed=bytes_accessed,
        ),
    )(x, *flat_params)

    return out[:n] if n_pad != n else out


class MLPPallas:
    """JAX/Pallas mirror of the PyTorch MLP module (no LoRA)."""

    def __init__(self, in_dim, h_dims=(128, 128), activation="tanh", key=None,
                 tile_m=512):
        self.activation = activation
        self.tile_m = tile_m
        self.params = []
        key = jax.random.PRNGKey(0) if key is None else key
        d_in = in_dim
        for h_dim in h_dims:
            key, kw, kb = jax.random.split(key, 3)
            # Mimic nn.Linear's uniform(-1/sqrt(fan_in), 1/sqrt(fan_in)) init.
            bound = 1.0 / jnp.sqrt(d_in)
            w = jax.random.uniform(
                kw, (d_in, h_dim), jnp.float32, minval=-bound, maxval=bound
            )
            b = jax.random.uniform(
                kb, (h_dim,), jnp.float32, minval=-bound, maxval=bound
            )
            self.params.append((w, b))
            d_in = h_dim
        self.out_dim = h_dims[-1]

    def __call__(self, x):
        # x: (..., in_dim) -> flatten leading dims, run ONE fused kernel, restore.
        lead = x.shape[:-1]
        x2 = x.reshape(-1, x.shape[-1])
        y = mlp_forward(x2, self.params, activation=self.activation,
                        tile_m=self.tile_m)
        return y.reshape(*lead, self.out_dim)


def _reference(x, params, activation="tanh"):
    act = _ACTIVATIONS[activation]
    lead = x.shape[:-1]
    y = x.reshape(-1, x.shape[-1])
    for w, b in params:
        y = act(y @ w + b)
    return y.reshape(*lead, -1)


if __name__ == "__main__":
    key = jax.random.PRNGKey(0)
    kx, kp = jax.random.split(key)

    batch, seq, in_dim = 2, 8, 32          # small shapes consistent with an MLP input
    h_dims = (128, 128)

    x = jax.random.normal(kx, (batch, seq, in_dim), dtype=jnp.float32)

    mlp = MLPPallas(in_dim, h_dims=h_dims, activation="tanh", key=kp)
    out = mlp(x)
    out = jax.block_until_ready(out)

    ref = _reference(x, mlp.params, activation="tanh")
    assert out.shape == (batch, seq, h_dims[-1]), out.shape
    assert jnp.allclose(out, ref, atol=1e-5, rtol=1e-5), "mismatch vs reference"

    # Also exercise a row count that is NOT a multiple of the tile (padding path)
    # and a non-tanh activation, against the reference.
    x_odd = jax.random.normal(kx, (3, 7, in_dim), dtype=jnp.float32)
    mlp_relu = MLPPallas(in_dim, h_dims=h_dims, activation="relu", key=kp)
    out_odd = jax.block_until_ready(mlp_relu(x_odd))
    ref_odd = _reference(x_odd, mlp_relu.params, activation="relu")
    assert jnp.allclose(out_odd, ref_odd, atol=1e-5, rtol=1e-5), "mismatch (odd/relu)"

    print("KERNEL_OK")
</pallas_src>

<mosaic_0001>
module attributes {stable_mosaic.version = 11 : i64} {
  func.func @_fused_mlp_kernel(%arg0: i32, %arg1: memref<16x32xf32, #tpu.memory_space<vmem>>, %arg2: memref<32x128xf32, #tpu.memory_space<vmem>>, %arg3: memref<1x128xf32, #tpu.memory_space<vmem>>, %arg4: memref<128x128xf32, #tpu.memory_space<vmem>>, %arg5: memref<1x128xf32, #tpu.memory_space<vmem>>, %arg6: memref<16x128xf32, #tpu.memory_space<vmem>>) attributes {dimension_semantics = [#tpu.dimension_semantics<parallel>], iteration_bounds = array<i64: 1>, scalar_prefetch = 0 : i64, scratch_operands = 0 : i64, tpu.core_type = #tpu.core_type<tc>, window_params = [{transform_indices = @transform_0, window_bounds = array<i64: 16, 32>}, {pipeline_mode = #tpu.pipeline_mode<synchronous>, transform_indices = @transform_1, window_bounds = array<i64: 32, 128>}, {pipeline_mode = #tpu.pipeline_mode<synchronous>, transform_indices = @transform_2, window_bounds = array<i64: 1, 128>}, {pipeline_mode = #tpu.pipeline_mode<synchronous>, transform_indices = @transform_3, window_bounds = array<i64: 128, 128>}, {pipeline_mode = #tpu.pipeline_mode<synchronous>, transform_indices = @transform_4, window_bounds = array<i64: 1, 128>}, {transform_indices = @transform_5, window_bounds = array<i64: 16, 128>}]} {
    %c0 = arith.constant 0 : index
    %c0_0 = arith.constant 0 : index
    %0 = vector.load %arg1[%c0, %c0_0] : memref<16x32xf32, #tpu.memory_space<vmem>>, vector<16x32xf32>
    %c0_1 = arith.constant 0 : index
    %c0_2 = arith.constant 0 : index
    %1 = vector.load %arg2[%c0_1, %c0_2] : memref<32x128xf32, #tpu.memory_space<vmem>>, vector<32x128xf32>
    %cst = arith.constant dense<0.000000e+00> : vector<16x128xf32>
    %2 = tpu.matmul %0, %1, %cst {dimension_numbers = #tpu.dot_dimension_numbers<[1], [0], [0], [1], [0, 0, 1, 1], [], []>} : vector<16x32xf32>, vector<32x128xf32>, vector<16x128xf32> -> vector<16x128xf32>
    %c0_3 = arith.constant 0 : index
    %c0_4 = arith.constant 0 : index
    %3 = vector.load %arg3[%c0_3, %c0_4] : memref<1x128xf32, #tpu.memory_space<vmem>>, vector<1x128xf32>
    %4 = vector.broadcast %3 : vector<1x128xf32> to vector<16x128xf32>
    %5 = arith.addf %2, %4 : vector<16x128xf32>
    %6 = math.tanh %5 : vector<16x128xf32>
    %c0_5 = arith.constant 0 : index
    %c0_6 = arith.constant 0 : index
    %7 = vector.load %arg4[%c0_5, %c0_6] : memref<128x128xf32, #tpu.memory_space<vmem>>, vector<128x128xf32>
    %cst_7 = arith.constant dense<0.000000e+00> : vector<16x128xf32>
    %8 = tpu.matmul %6, %7, %cst_7 {dimension_numbers = #tpu.dot_dimension_numbers<[1], [0], [0], [1], [0, 0, 1, 1], [], []>} : vector<16x128xf32>, vector<128x128xf32>, vector<16x128xf32> -> vector<16x128xf32>
    %c0_8 = arith.constant 0 : index
    %c0_9 = arith.constant 0 : index
    %9 = vector.load %arg5[%c0_8, %c0_9] : memref<1x128xf32, #tpu.memory_space<vmem>>, vector<1x128xf32>
    %10 = vector.broadcast %9 : vector<1x128xf32> to vector<16x128xf32>
    %11 = arith.addf %8, %10 : vector<16x128xf32>
    %12 = math.tanh %11 : vector<16x128xf32>
    %c0_10 = arith.constant 0 : index
    %c0_11 = arith.constant 0 : index
    %13 = vector.load %arg6[%c0_10, %c0_11] : memref<16x128xf32, #tpu.memory_space<vmem>>, vector<16x128xf32>
    tpu.vector_store %arg6[%c0_10, %c0_11], %12 {strides = array<i32>} : memref<16x128xf32, #tpu.memory_space<vmem>>, vector<16x128xf32>,
    return
  }
  func.func @transform_0(%arg0: i32) -> (i32, i32) {
    %c0_i32 = arith.constant 0 : i32
    %c0_i32_0 = arith.constant 0 : i32
    return %arg0, %c0_i32 : i32, i32
  }
  func.func @transform_1(%arg0: i32) -> (i32, i32) {
    %c0_i32 = arith.constant 0 : i32
    %c0_i32_0 = arith.constant 0 : i32
    %c0_i32_1 = arith.constant 0 : i32
    return %c0_i32, %c0_i32_0 : i32, i32
  }
  func.func @transform_2(%arg0: i32) -> (i32, i32) {
    %c0_i32 = arith.constant 0 : i32
    %c0_i32_0 = arith.constant 0 : i32
    %c0_i32_1 = arith.constant 0 : i32
    return %c0_i32, %c0_i32_0 : i32, i32
  }
  func.func @transform_3(%arg0: i32) -> (i32, i32) {
    %c0_i32 = arith.constant 0 : i32
    %c0_i32_0 = arith.constant 0 : i32
    %c0_i32_1 = arith.constant 0 : i32
    return %c0_i32, %c0_i32_0 : i32, i32
  }
  func.func @transform_4(%arg0: i32) -> (i32, i32) {
    %c0_i32 = arith.constant 0 : i32
    %c0_i32_0 = arith.constant 0 : i32
    %c0_i32_1 = arith.constant 0 : i32
    return %c0_i32, %c0_i32_0 : i32, i32
  }
  func.func @transform_5(%arg0: i32) -> (i32, i32) {
    %c0_i32 = arith.constant 0 : i32
    %c0_i32_0 = arith.constant 0 : i32
    return %arg0, %c0_i32 : i32, i32
  }
}

</mosaic_0001>

<bundles_post_ra>
// kernel: tpu_custom_call.1
= control target key start
LH: loop header
LB: loop body
LE: loop exit
PB: predicated region body
PF: predicated region fallthrough
CT: control target
= control target key end

     0   :  { %10 = vsyncpa [#allocation3], 0  ;;  %s381_s0 = inlined_call_operand.hbm [shape: f32[16,32], index: 0, kind: input, shape index: {}]   ;;  %s382_s1 = inlined_call_operand.hbm [shape: f32[32,128], index: 1, kind: input, shape index: {}]   ;;  %s383_s2 = inlined_call_operand.vmem [shape: f32[1,128], index: 2, kind: input, shape index: {}]   ;;  %s384_s3 = inlined_call_operand.hbm [shape: f32[128,128], index: 3, kind: input, shape index: {}]   ;;  %s385_s4 = inlined_call_operand.vmem [shape: f32[1,128], index: 4, kind: input, shape index: {}]   ;;  %s386_s5 = inlined_call_operand.hbm [shape: f32[16,128], index: 5, kind: output, shape index: {}]  }
   0x1   :  { %11 = vsyncpa [#allocation6], 0 }
   0x2   :  { %12 = vsyncpa [#allocation4], 0  ;;  %s30_s20 = sshll.u32 %s382_s1, 4  ;;  %s313_s21 = smov [#allocation5]   ;;  %s31_s20 = int_to_ptr.hbm [resolvable:$true] %s30_s20 }
   0x3   :  { %s32_s22 = sshll.u32 %s313_s21, 4  ;;  %s17_s25 = sshll.u32 %s381_s0, 4  ;;  %s33_s22 = int_to_ptr.vmem [resolvable:$true] %s32_s22  ;;  %s18_s25 = int_to_ptr.hbm [resolvable:$true] %s17_s25 }
   0x4   :  { %s314_s26 = smov 128   ;;  %s315_s27 = smov 8  }
   0x5   :  { %38 = dma.hbm_to_vmem [thread:$0]  %s31_s20, 512, %s33_s22, [#allocation6], %s314_s26, %s314_s26, %s315_s27  }
   0x6   :  { %s316_s28 = smov [#allocation2]   ;;  %s45_s1 = sshll.u32 %s384_s3, 4  ;;  %s46_s1 = int_to_ptr.hbm [resolvable:$true] %s45_s1 }
   0x7   :  { %s19_s29 = sshll.u32 %s316_s28, 4  ;;  %s317_s0 = smov [#allocation7]   ;;  %s20_s29 = int_to_ptr.vmem [resolvable:$true] %s19_s29 }
   0x8   :  { %25 = dma.hbm_to_vmem [thread:$0]  %s18_s25, 256, %s20_s29, [#allocation3], %s314_s26, %s314_s26, %s315_s27  }
   0x9   :  { %s47_s7 = sshll.u32 %s317_s0, 4  ;;  %s48_s7 = int_to_ptr.vmem [resolvable:$true] %s47_s7 }
   0xa   :  { %53 = dma.hbm_to_vmem [thread:$0]  %s46_s1, 2048, %s48_s7, [#allocation6], %s314_s26, %s314_s26, %s315_s27  }
   0xb   :  { %307 = dma.done.wait [#allocation3], 256  }
   0xc   :  { %308 = vsyncadd [#allocation3], 4294967040 }
   0xd   :  { %309 = dma.done.wait [#allocation6], 2560  }
   0xe   :  { %310 = vsyncadd [#allocation6], 4294964736  ;;  %v73_v0 = vld [vmem:[#allocation5 + $0x18] sm:$0xff]  ;;  %v72_v1 = vld [vmem:[#allocation5 + $0x10] sm:$0xff]  ;;  %vm78_vm0 = vcmask 261120   ;;  %s163_s14 = sshll.u32 %s386_s5, 4  ;;  %s164_s14 = int_to_ptr.hbm [resolvable:$true] %s163_s14 }
   0xf   :  { %97 = vmatpush.msra.mxu0 %v73_v0  ;;  %v71_v2 = vld [vmem:[#allocation5 + $0x8] sm:$0xff]  ;;  %v125_v3 = vld [vmem:[#allocation7 + $0x78] sm:$0xff]  ;;  %v124_v4 = vld [vmem:[#allocation7 + $0x70] sm:$0xff] }
  0x10   :  { %130 = vmatpush.msra.mxu1 %v125_v3  ;;  %v70_v5 = vld [vmem:[#allocation5] sm:$0xff]  ;;  %v123_v6 = vld [vmem:[#allocation7 + $0x68] sm:$0xff]  ;;  %179 = vmatpush.msra.mxu2 %v125_v3  ;;  %v68_v7 = vld [vmem:[#allocation2] sm:$0xff] }
  0x11   :  { %98 = vmatpush.msra.mxu0 %v72_v1  ;;  %v122_v8 = vld [vmem:[#allocation7 + $0x60] sm:$0xff]  ;;  %v121_v9 = vld [vmem:[#allocation7 + $0x58] sm:$0xff]  ;;  %v120_v10 = vld [vmem:[#allocation7 + $0x50] sm:$0xff] }
  0x12   :  { %131 = vmatpush.msra.mxu1 %v124_v4  ;;  %180 = vmatpush.msra.mxu2 %v124_v4  ;;  %v119_v11 = vld [vmem:[#allocation7 + $0x48] sm:$0xff]  ;;  %v69_v12 = vld [vmem:[#allocation2 + $0x8] sm:$0xff]  ;;  %v118_v13 = vld [vmem:[#allocation7 + $0x40] sm:$0xff] }
  0x13   :  { %99 = vmatpush.msra.mxu0 %v71_v2  ;;  %v117_v14 = vld [vmem:[#allocation7 + $0x38] sm:$0xff]  ;;  %v116_v15 = vld [vmem:[#allocation7 + $0x30] sm:$0xff]  ;;  %v115_v16 = vld [vmem:[#allocation7 + $0x28] sm:$0xff] }
  0x14   :  { %132 = vmatpush.msra.mxu1 %v123_v6  ;;  %181 = vmatpush.msra.mxu2 %v123_v6  ;;  %v114_v17 = vld [vmem:[#allocation7 + $0x20] sm:$0xff]  ;;  %v113_v18 = vld [vmem:[#allocation7 + $0x18] sm:$0xff]  ;;  %v112_v19 = vld [vmem:[#allocation7 + $0x10] sm:$0xff] }
  0x15   :  { %100 = vmatpush.msra.mxu0 %v70_v5  ;;  %v111_v20 = vld [vmem:[#allocation7 + $0x8] sm:$0xff]  ;;  %v110_v21 = vld [vmem:[#allocation7] sm:$0xff]  ;;  %v201_v22 = vld [vmem:[%s383_s2] ss:$0 sm:$0xff]  ;;  %s318_s2 = smov [#allocation8]  }
  0x16   :  { %177 = vmatmul.msk.f32.vlgmr.msra.gmra.mxu0 %vm78_vm0, %v68_v7  ;;  %133 = vmatpush.msra.mxu1 %v122_v8  ;;  %v202_v29 = vld [vmem:[%s385_s4] ss:$0 sm:$0xff]  ;;  %s161_s11 = sshll.u32 %s318_s2, 4  ;;  %s162_s11 = int_to_ptr.vmem [resolvable:$true] %s161_s11 }
  0x17   :  { %182 = vmatpush.msra.mxu2 %v122_v8 }
  0x18   :  { %134 = vmatpush.msra.mxu1 %v121_v9 }
  0x19   :  { %183 = vmatpush.msra.mxu2 %v121_v9 }
  0x1a   :  { %135 = vmatpush.msra.mxu1 %v120_v10 }
  0x1b   :  { %184 = vmatpush.msra.mxu2 %v120_v10 }
  0x1c   :  { %136 = vmatpush.msra.mxu1 %v119_v11 }
  0x1d   :  { %185 = vmatpush.msra.mxu2 %v119_v11 }
  0x1e   :  { %178 = vmatmul.msk.f32.gmra.mxu0 %vm78_vm0, %v69_v12  ;;  %137 = vmatpush.msra.mxu1 %v118_v13 }
  0x1f   :  { %186 = vmatpush.msra.mxu2 %v118_v13 }
  0x20   :  { %138 = vmatpush.msra.mxu1 %v117_v14 }
  0x21   :  { %187 = vmatpush.msra.mxu2 %v117_v14 }
  0x22   :  { %139 = vmatpush.msra.mxu1 %v116_v15 }
  0x23   :  { %188 = vmatpush.msra.mxu2 %v116_v15 }
  0x24   :  { %140 = vmatpush.msra.mxu1 %v115_v16 }
  0x25   :  { %189 = vmatpush.msra.mxu2 %v115_v16 }
  0x26   :  { %141 = vmatpush.msra.mxu1 %v114_v17 }
  0x27   :  { %190 = vmatpush.msra.mxu2 %v114_v17 }
  0x28   :  { %142 = vmatpush.msra.mxu1 %v113_v18 }
  0x29   :  { %191 = vmatpush.msra.mxu2 %v113_v18 }
  0x2a   :  { %143 = vmatpush.msra.mxu1 %v112_v19 }
  0x2b   :  { %192 = vmatpush.msra.mxu2 %v112_v19 }
  0x2c   :  { %144 = vmatpush.msra.mxu1 %v111_v20 }
  0x2d   :  { %193 = vmatpush.msra.mxu2 %v111_v20 }
  0x2e   :  { %145 = vmatpush.msra.mxu1 %v110_v21 }
  0x2f   :  { %194 = vmatpush.msra.mxu2 %v110_v21 }
  0x93   :  { %v102_v23 = vpop.f32.mrf.mxu0 }
  0x94   :  { %v103_v24 = vadd.f32 %v201_v22, %v102_v23 }
  0x96   :  { %203 = vtanh.f32 %v103_v24 }
  0x9b   :  { %v105_v25 = vpop.f32.mrf.mxu0 }
  0x9c   :  { %v204_v26 = vpop.eup %203  ;;  %v106_v27 = vadd.f32 %v201_v22, %v105_v25 }
  0x9d   :  { %146 = vmatmul.f32.vlgmr.msra.gmra.mxu1 %v204_v26 }
  0x9e   :  { %205 = vtanh.f32 %v106_v27 }
  0xa4   :  { %v206_v28 = vpop.eup %205 }
  0xa5   :  { %149 = vmatmul.f32.vlgmr.msra.gmra.mxu2 %v206_v28 }
 0x11a   :  { %v147_v30 = vpop.f32.mrf.mxu1 }
 0x11b   :  { %v148_v31 = vadd.f32 %v202_v29, %v147_v30 }
 0x11d   :  { %207 = vtanh.f32 %v148_v31 }
 0x123   :  { %v208_v32 = vpop.eup %207 }
 0x124   :  { %155 = vst [vmem:[#allocation8] sm:$0xff] %v208_v32 }
 0x128   :  { %v150_v33 = vpop.f32.mrf.mxu2 }
 0x129   :  { %v151_v34 = vadd.f32 %v202_v29, %v150_v33 }
 0x12b   :  { %209 = vtanh.f32 %v151_v34 }
 0x131   :  { %v210_v35 = vpop.eup %209 }
 0x132   :  { %156 = vst [vmem:[#allocation8 + $0x8] sm:$0xff] %v210_v35 }
 0x133   :  { %169 = dma.vmem_to_hbm [thread:$0]  %s162_s11, 256, %s164_s14, [#allocation4], %s314_s26, %s314_s26, %s315_s27  }
 0x134   :  { %311 = dma.done.wait [#allocation4], 256  }
 0x135   :  { %312 = vsyncadd [#allocation4], 4294967040 }
 0x136   :  { %174 = vsyncpa [#allocation3], 1 }
 0x137   :  { %175 = vsyncpa [#allocation6], 1 }
 0x138   :  { %176 = vsyncpa [#allocation4], 1 }

</bundles_post_ra>
